<compile_context>
chip_gen: v5e
topology: v5e:2x2
jax: 0.10.0
libtpu: 0.0.40
codegen_flags: <defaults>
</compile_context>

<pallas_src>
import functools

import jax
import jax.numpy as jnp
from jax import lax
from jax.experimental import pallas as pl
from jax.experimental.pallas import tpu as pltpu


def _round_up(a, m):
    return -(-a // m) * m


def _res_block_kernel(xt_ref, w_ref, b_ref, o_ref, *, K, TL, pad):
    # xt_ref: (1, C, TL + K - 1) compute-dtype tile of the padded, batch-folded slab
    # w_ref : (C, K*C)           conv weights, taps stacked on the contraction axis
    # b_ref : (C, 1)             f32 bias
    # o_ref : (C, TL)            f32 output tile (lane-dense)
    # K shifted windows read straight from the VMEM ref (unaligned loads overlap
    # with the matmul); window `pad` doubles as the residual input.
    windows = [xt_ref[0, :, k:k + TL] for k in range(K)]
    m = jnp.concatenate(windows, axis=0)                      # (K*C, TL)
    acc = jnp.dot(w_ref[...], m, preferred_element_type=jnp.float32)   # (C, TL) f32
    acc = acc + b_ref[...]                                    # bias, broadcast over lanes
    # SiLU: x * sigmoid(x); exp + approximate reciprocal both live on the EUP slot.
    act = acc * pl.reciprocal(1.0 + jnp.exp(-acc), approx=True)
    res = windows[pad].astype(jnp.float32)                    # residual = x itself
    o_ref[...] = (res + act).astype(o_ref.dtype)


def res_block_pallas(x, w, b, *, stride=1, padding=0,
                     compute_dtype=jnp.bfloat16, tile_l=512):
    """x: (N, C, L), w: (C, C, K), b: (C,) -> (N, C, L) = x + silu(conv1d(x))."""
    N, C, L = x.shape
    C_out, C_in, K = w.shape
    assert C_out == C and C_in == C
    L_out = (L + 2 * padding - K) // stride + 1
    # Residual add in the PyTorch module requires matching lengths.
    assert L_out == L, "res_block needs conv output length == input length"
    # TODO(synk): stride > 1 with matching output length is not implemented in the
    # Pallas fast path (effectively unreachable for this module's residual add).
    assert stride == 1, "only stride == 1 is supported by the Pallas kernel"
    assert 2 * padding == K - 1  # implied by L_out == L and stride == 1

    Lp = L + 2 * padding
    T_valid = N * Lp                               # batch folded into the lane axis
    TL = _round_up(min(tile_l, _round_up(T_valid, 128)), 128)
    num_tiles = -(-T_valid // TL)
    Ttot = num_tiles * TL

    # (C, N*Lp) slab; each batch carries its own zero padding, and 2p == K-1
    # guarantees conv windows never leak across batch seams.
    slab = jnp.pad(x, ((0, 0), (0, 0), (padding, padding)))          # (N, C, Lp)
    slab = jnp.transpose(slab, (1, 0, 2)).reshape(C, T_valid)
    slab = jnp.pad(slab, ((0, 0), (0, Ttot + K - 1 - T_valid)))
    slab = slab.astype(compute_dtype)

    # Pre-cut overlapping tiles (halo = K-1 columns) so every grid step is a
    # self-contained, lane-dense block that BlockSpec can double-buffer.
    tiles = jnp.stack(
        [lax.slice(slab, (0, i * TL), (C, i * TL + TL + K - 1))
         for i in range(num_tiles)], axis=0)                  # (num_tiles, C, TL+K-1)

    # W[c_out, c_in, k] -> W2[c_out, k*C + c_in]  (matches the im2col stacking order)
    w2 = jnp.transpose(w, (0, 2, 1)).reshape(C, K * C).astype(compute_dtype)
    b2 = b.reshape(C, 1).astype(jnp.float32)

    kernel = functools.partial(_res_block_kernel, K=K, TL=TL, pad=padding)
    out_slab = pl.pallas_call(
        kernel,
        out_shape=jax.ShapeDtypeStruct((C, Ttot), x.dtype),
        grid_spec=pltpu.PrefetchScalarGridSpec(
            num_scalar_prefetch=0,
            grid=(num_tiles,),
            in_specs=[
                pl.BlockSpec((1, C, TL + K - 1), lambda i: (i, 0, 0)),
                pl.BlockSpec((C, K * C), lambda i: (0, 0)),
                pl.BlockSpec((C, 1), lambda i: (0, 0)),
            ],
            out_specs=pl.BlockSpec((C, TL), lambda i: (0, i)),
        ),
        compiler_params=pltpu.CompilerParams(
            dimension_semantics=("parallel",)),
    )(tiles, w2, b2)

    # Undo the batch folding / padding: slab column n*Lp + j is batch n, position j.
    out = out_slab[:, :T_valid].reshape(C, N, Lp)[:, :, :L]
    return jnp.transpose(out, (1, 0, 2))


def _reference(x, w, b, *, stride, padding):
    # Pure-JAX reference: Conv1d (NCL) + silu + residual.
    conv = lax.conv_general_dilated(
        x, w, window_strides=(stride,), padding=[(padding, padding)],
        dimension_numbers=("NCH", "OIH", "NCH"))
    conv = conv + b[None, :, None]
    return x + conv * jax.nn.sigmoid(conv)


def _run_case(key, N, C, L, K, padding, tol):
    kx, kw, kb = jax.random.split(key, 3)
    x = jax.random.normal(kx, (N, C, L), dtype=jnp.float32)
    # Deterministic init mimicking nn.Conv1d: U(-1/sqrt(C*K), 1/sqrt(C*K))
    bound = 1.0 / (C * K) ** 0.5
    w = jax.random.uniform(kw, (C, C, K), jnp.float32, minval=-bound, maxval=bound)
    b = jax.random.uniform(kb, (C,), jnp.float32, minval=-bound, maxval=bound)

    out = res_block_pallas(x, w, b, stride=1, padding=padding)
    out = jax.block_until_ready(out)
    ref = _reference(x, w, b, stride=1, padding=padding)
    assert out.shape == (N, C, L)
    # bf16 matmul inputs -> loosened tolerance vs the f32 reference.
    assert jnp.allclose(out, ref, atol=tol, rtol=tol), "mismatch vs reference"


if __name__ == "__main__":
    key = jax.random.PRNGKey(0)
    k1, k2 = jax.random.split(key)
    # res_block(covsiz=3, chanal=8, stride=1, padding=1): tiny, single-tile path.
    _run_case(k1, N=2, C=8, L=16, K=3, padding=1, tol=2e-2)
    # Larger shape exercising the multi-tile (length-tiled, halo) path.
    _run_case(k2, N=2, C=16, L=640, K=5, padding=2, tol=2e-2)
    print("KERNEL_OK")
</pallas_src>

<mosaic_0001>
module attributes {stable_mosaic.version = 11 : i64} {
  func.func @_res_block_kernel(%arg0: i32, %arg1: memref<1x8x130xbf16, #tpu.memory_space<vmem>>, %arg2: memref<8x24xbf16, #tpu.memory_space<vmem>>, %arg3: memref<8x1xf32, #tpu.memory_space<vmem>>, %arg4: memref<8x128xf32, #tpu.memory_space<vmem>>) attributes {dimension_semantics = [#tpu.dimension_semantics<parallel>], iteration_bounds = array<i64: 1>, scalar_prefetch = 0 : i64, scratch_operands = 0 : i64, tpu.core_type = #tpu.core_type<tc>, window_params = [{transform_indices = @transform_0, window_bounds = array<i64: 1, 8, 130>}, {pipeline_mode = #tpu.pipeline_mode<synchronous>, transform_indices = @transform_1, window_bounds = array<i64: 8, 24>}, {pipeline_mode = #tpu.pipeline_mode<synchronous>, transform_indices = @transform_2, window_bounds = array<i64: 8, 1>}, {transform_indices = @transform_3, window_bounds = array<i64: 8, 128>}]} {
    %c0 = arith.constant 0 : index
    %c0_0 = arith.constant 0 : index
    %c0_1 = arith.constant 0 : index
    %0 = vector.load %arg1[%c0, %c0_0, %c0_1] : memref<1x8x130xbf16, #tpu.memory_space<vmem>>, vector<1x8x128xbf16>
    %1 = vector.shape_cast %0 : vector<1x8x128xbf16> to vector<8x128xbf16>
    %c0_2 = arith.constant 0 : index
    %c0_3 = arith.constant 0 : index
    %c1 = arith.constant 1 : index
    %2 = vector.load %arg1[%c0_2, %c0_3, %c1] : memref<1x8x130xbf16, #tpu.memory_space<vmem>>, vector<1x8x128xbf16>
    %3 = vector.shape_cast %2 : vector<1x8x128xbf16> to vector<8x128xbf16>
    %c0_4 = arith.constant 0 : index
    %c0_5 = arith.constant 0 : index
    %c2 = arith.constant 2 : index
    %4 = vector.load %arg1[%c0_4, %c0_5, %c2] : memref<1x8x130xbf16, #tpu.memory_space<vmem>>, vector<1x8x128xbf16>
    %5 = vector.shape_cast %4 : vector<1x8x128xbf16> to vector<8x128xbf16>
    %6 = tpu.concatenate %1, %3, %5 in 0 : vector<8x128xbf16>, vector<8x128xbf16>, vector<8x128xbf16> -> vector<24x128xbf16>
    %c0_6 = arith.constant 0 : index
    %c0_7 = arith.constant 0 : index
    %7 = vector.load %arg2[%c0_6, %c0_7] : memref<8x24xbf16, #tpu.memory_space<vmem>>, vector<8x24xbf16>
    %cst = arith.constant dense<0.000000e+00> : vector<8x128xf32>
    %8 = tpu.matmul %7, %6, %cst {dimension_numbers = #tpu.dot_dimension_numbers<[1], [0], [0], [1], [0, 0, 1, 1], [], []>} : vector<8x24xbf16>, vector<24x128xbf16>, vector<8x128xf32> -> vector<8x128xf32>
    %c0_8 = arith.constant 0 : index
    %c0_9 = arith.constant 0 : index
    %9 = vector.load %arg3[%c0_8, %c0_9] : memref<8x1xf32, #tpu.memory_space<vmem>>, vector<8x1xf32>
    %10 = vector.broadcast %9 : vector<8x1xf32> to vector<8x128xf32>
    %11 = arith.addf %8, %10 : vector<8x128xf32>
    %cst_10 = arith.constant 0.000000e+00 : f32
    %12 = vector.broadcast %cst_10 : f32 to vector<8x128xf32>
    %13 = arith.subf %12, %11 : vector<8x128xf32>
    %14 = math.exp %13 : vector<8x128xf32>
    %cst_11 = arith.constant 1.000000e+00 : f32
    %15 = vector.broadcast %cst_11 : f32 to vector<8x128xf32>
    %16 = arith.addf %15, %14 : vector<8x128xf32>
    %17 = tpu.reciprocal %16 {approx = true} : vector<8x128xf32> -> vector<8x128xf32>
    %18 = arith.mulf %11, %17 : vector<8x128xf32>
    %19 = arith.extf %3 : vector<8x128xbf16> to vector<8x128xf32>
    %20 = arith.addf %19, %18 : vector<8x128xf32>
    %c0_12 = arith.constant 0 : index
    %c0_13 = arith.constant 0 : index
    %21 = vector.load %arg4[%c0_12, %c0_13] : memref<8x128xf32, #tpu.memory_space<vmem>>, vector<8x128xf32>
    tpu.vector_store %arg4[%c0_12, %c0_13], %20 {strides = array<i32>} : memref<8x128xf32, #tpu.memory_space<vmem>>, vector<8x128xf32>,
    return
  }
  func.func @transform_0(%arg0: i32) -> (i32, i32, i32) {
    %c0_i32 = arith.constant 0 : i32
    %c0_i32_0 = arith.constant 0 : i32
    %c0_i32_1 = arith.constant 0 : i32
    return %arg0, %c0_i32, %c0_i32_0 : i32, i32, i32
  }
  func.func @transform_1(%arg0: i32) -> (i32, i32) {
    %c0_i32 = arith.constant 0 : i32
    %c0_i32_0 = arith.constant 0 : i32
    %c0_i32_1 = arith.constant 0 : i32
    return %c0_i32, %c0_i32_0 : i32, i32
  }
  func.func @transform_2(%arg0: i32) -> (i32, i32) {
    %c0_i32 = arith.constant 0 : i32
    %c0_i32_0 = arith.constant 0 : i32
    %c0_i32_1 = arith.constant 0 : i32
    return %c0_i32, %c0_i32_0 : i32, i32
  }
  func.func @transform_3(%arg0: i32) -> (i32, i32) {
    %c0_i32 = arith.constant 0 : i32
    %c0_i32_0 = arith.constant 0 : i32
    return %c0_i32, %arg0 : i32, i32
  }
}

</mosaic_0001>

<bundles_post_ra>
// kernel: tpu_custom_call.1
= control target key start
LH: loop header
LB: loop body
LE: loop exit
PB: predicated region body
PF: predicated region fallthrough
CT: control target
= control target key end

     0   :  { %8 = vsyncpa [#allocation3], 0  ;;  %s234_s0 = inlined_call_operand.vmem [shape: bf16[1,8,130], index: 0, kind: input, shape index: {}]   ;;  %s235_s1 = inlined_call_operand.hbm [shape: bf16[8,24], index: 1, kind: input, shape index: {}]   ;;  %s236_s2 = inlined_call_operand.vmem [shape: f32[8,1], index: 2, kind: input, shape index: {}]   ;;  %s237_s3 = inlined_call_operand.hbm [shape: f32[8,128], index: 3, kind: output, shape index: {}]  }
   0x1   :  { %9 = vsyncpa [#allocation4], 0  ;;  %s17_s14 = sshll.u32 %s235_s1, 4  ;;  %s187_s15 = smov [#allocation2]   ;;  %s18_s14 = int_to_ptr.hbm [resolvable:$true] %s17_s14 }
   0x2   :  { %s19_s16 = sshll.u32 %s187_s15, 4  ;;  %s20_s16 = int_to_ptr.vmem [resolvable:$true] %s19_s16 }
   0x3   :  { %22 = dma.hbm_to_vmem [thread:$0]  %s18_s14, 64, %s20_s16, [#allocation3]  }
   0x4   :  { %183 = dma.done.wait [#allocation3], 64  }
   0x5   :  { %184 = vsyncadd [#allocation3], 4294967232  ;;  %v31_v0 = vld [vmem:[%s234_s0] sm:$0xff]  ;;  %s188_s19 = smov 127   ;;  %s189_s20 = smov 126   ;;  %v190_v6 = vmov 0  }
   0x6   :  { %v33_v1 = vunpack.c.l.b16 %v31_v0  ;;  %v34_v3 = vunpack.c.h.b16 %v31_v0  ;;  %v55_v5 = vld [vmem:[%s236_s2] sm:$0xff]  ;;  %129 = vset.pattern.permute.xlu2 %v190_v6  ;;  %130 = vset.pattern.permute.xlu0 %v190_v6  ;;  %vm47_vm0 = vcmask 1031168   ;;  %vm49_vm1 = vcmask 1043456   ;;  %s191_s2 = smov 1   ;;  %s112_s27 = sshll.u32 %s237_s3, 4  ;;  %s113_s27 = int_to_ptr.hbm [resolvable:$true] %s112_s27 }
   0x7   :  { %58 = vperm.xlu2 %129, %v55_v5   ;;  %vm41_vm2 = vcmask 1039360   ;;  %v30_v14 = vld [vmem:[%s234_s0] sm:$0xf]  ;;  %vm61_vm3 = vcmask 195584   ;;  %v87_v27 = vunpack.c.l.bf16 %v31_v0  ;;  %v88_v28 = vunpack.c.h.bf16 %v31_v0  ;;  %s192_s0 = smov [#allocation5]  }
   0x8   :  { %v35_v2 = vpack.c.b16 %v33_v1, %v33_v1  ;;  %v36_v4 = vpack.c.b16 %v34_v3, %v34_v3  ;;  %v54_v16 = vld [vmem:[#allocation2] sm:$0xf]  ;;  %s110_s24 = sshll.u32 %s192_s0, 4  ;;  %s111_s24 = int_to_ptr.vmem [resolvable:$true] %s110_s24 }
   0xa   :  { %37 = vrot.lane.b32.xlu1 %v35_v2, %s188_s19  ;;  %43 = vrot.lane.b32.xlu0 %v35_v2, %s189_s20 }
  0x12   :  { %39 = vrot.lane.b32.xlu1 %v36_v4, %s188_s19  ;;  %45 = vrot.lane.b32.xlu0 %v36_v4, %s189_s20 }
  0x61   :  { %v59_v17 = vpop.permute.xlu2 %58 }
  0x7c   :  { %v38_v7 = vpop.permute.xlu1 %37  ;;  %v44_v8 = vpop.permute.xlu0 %43 }
  0x84   :  { %v40_v9 = vpop.permute.xlu1 %39  ;;  %v46_v10 = vpop.permute.xlu0 %45 }
  0x85   :  { %v48_v11 = vsel %vm47_vm0, %v44_v8, %v46_v10  ;;  %v42_v13 = vsel %vm41_vm2, %v38_v7, %v40_v9 }
  0x86   :  { %v66_v12 = vsel %vm49_vm1, %v48_v11, 0  ;;  %v52_v15 = vsel %vm49_vm1, %v30_v14, %v42_v13 }
  0x87   :  { %74 = vmatpush.bf16.msra.mxu0 %v66_v12 }
  0x8b   :  { %75 = vmatpush.bf16.msra.mxu0 %v52_v15 }
  0x8e   :  { %122 = vmatmul.msk.bf16.vlgmr.msra.gmra.mxu0 %vm61_vm3, %v54_v16 }
 0x10b   :  { %v77_v18 = vpop.f32.mrf.mxu0 }
 0x10c   :  { %v78_v19 = vadd.f32 %v77_v18, %v59_v17 }
 0x10e   :  { %v81_v20 = vsub.f32 0.0, %v78_v19 }
 0x110   :  { %v82_v21 = vmul.f32 1.442695, %v81_v20 }
 0x112   :  { %131 = vpow2.f32 %v82_v21 }
 0x113   :  { %v79_v22 = vpop.f32.mrf.mxu0 }
 0x118   :  { %v132_v23 = vpop.eup %131 }
 0x119   :  { %v84_v24 = vadd.f32 1.0, %v132_v23 }
 0x11b   :  { %133 = vrcp.f32 %v84_v24 }
 0x121   :  { %v134_v25 = vpop.eup %133 }
 0x122   :  { %v86_v26 = vmul.f32 %v134_v25, %v78_v19 }
 0x124   :  { %90 = vrot.lane.b32.xlu2 %v86_v26, %s191_s2 }
 0x17e   :  { %v91_v29 = vpop.permute.xlu2 %90 }
 0x17f   :  { %v93_v30 = vadd.f32 %v91_v29, %v87_v27  ;;  %v94_v31 = vadd.f32 %v91_v29, %v88_v28 }
 0x181   :  { %99 = vrot.lane.b32.xlu1 %v94_v31, %s188_s19  ;;  %97 = vrot.lane.b32.xlu0 %v93_v30, %s188_s19 }
 0x1f3   :  { %v100_v32 = vpop.permute.xlu1 %99  ;;  %v98_v33 = vpop.permute.xlu0 %97 }
 0x1f4   :  { %v102_v34 = vsel %vm41_vm2, %v98_v33, %v100_v32 }
 0x1f5   :  { %104 = vst [vmem:[#allocation5] sm:$0xff] %v102_v34 }
 0x1f6   :  { %115 = dma.vmem_to_hbm [thread:$0]  %s111_s24, 128, %s113_s27, [#allocation4]  }
 0x1f7   :  { %185 = dma.done.wait [#allocation4], 128  }
 0x1f8   :  { %186 = vsyncadd [#allocation4], 4294967168 }
 0x1f9   :  { %120 = vsyncpa [#allocation3], 1 }
 0x1fa   :  { %121 = vsyncpa [#allocation4], 1 }

</bundles_post_ra>
